<compile_context>
chip_gen: v7x
topology: tpu7x:2x2x1
jax: 0.10.0
libtpu: 0.0.40
codegen_flags: <defaults>
</compile_context>

<pallas_src>
import jax
import jax.numpy as jnp
from jax import lax
from jax.experimental import pallas as pl
from jax.experimental.pallas import tpu as pltpu


# ----------------------------------------------------------------------------- kernel body
def _head_kernel(x_ref, a1, c1, a2, c2, a3, c3, a4, c4, a5, c5, out_ref):
    f32 = jnp.float32

    def gemm(h, a_ref, c_ref):
        return jnp.dot(h.astype(a_ref.dtype), a_ref[...],
                       preferred_element_type=f32) + c_ref[...]

    h = x_ref[...].astype(f32)                      # (NB, Cin*L)
    h = jnp.maximum(gemm(h, a1, c1), 0.0)           # conv1 + bn1 + relu      (dropout = id)
    h = jnp.maximum(gemm(h, a2, c2), 0.0)           # pool1 + conv2 + bn2 + relu (dropout = id)
    h = jnp.maximum(gemm(h, a3, c3), 0.0)           # pool2 + flatten + lin1 + lin_bn1 + relu
    h = jnp.maximum(gemm(h, a4, c4), 0.0)           # lin2 + lin_bn2 + relu
    out_ref[...] = gemm(h, a5, c5).astype(out_ref.dtype)   # lin3


# ------------------------------------------------------------------- host-side weight folding
def _bn_fold(g, be, m, v, eps):
    s = g / jnp.sqrt(v + eps)
    return s, be - m * s


def fold_params(params, *, seq_len, kernel_size, padding, eps=1e-5,
                weight_dtype=jnp.float32):
    """Fold BN(eval), AvgPool and the conv->GEMM rewrite into five (A, c) GEMM factors."""
    K, pad, L = kernel_size, padding, seq_len
    w1, b1, g1, be1, m1, v1 = params["conv1"]
    w2, b2, g2, be2, m2, v2 = params["conv2"]
    lw1, lb1, lg1, lbe1, lm1, lv1 = params["lin1"]
    lw2, lb2, lg2, lbe2, lm2, lv2 = params["lin2"]
    lw3, lb3 = params["lin3"]

    H, Cin, _ = w1.shape
    O = w2.shape[0]
    LH, LN = lw1.shape[0], lw2.shape[0]

    L1 = L + 2 * pad - K + 1          # conv1 out length
    L2 = L1 // 2                      # pool1 out length
    Lp = L2 + 2 * pad                 # conv2 padded input length
    L3 = L2 + 2 * pad - K + 1         # conv2 out length
    L4 = L3 // 2                      # pool2 out length
    assert lw1.shape[1] == O * L4, "lin_input must equal output_dim * pooled length"

    f32 = jnp.float32
    s1, t1 = _bn_fold(g1, be1, m1, v1, eps)
    s2, t2 = _bn_fold(g2, be2, m2, v2, eps)
    ls1, lt1 = _bn_fold(lg1, lbe1, lm1, lv1, eps)
    ls2, lt2 = _bn_fold(lg2, lbe2, lm2, lv2, eps)

    w1f = (w1 * s1[:, None, None]).astype(f32)      # (H, Cin, K)
    b1f = (s1 * b1 + t1).astype(f32)                # (H,)
    w2f = (w2 * s2[:, None, None]).astype(f32)      # (O, H, K)
    b2f = (s2 * b2 + t2).astype(f32)                # (O,)
    lw1f = (lw1 * ls1[:, None]).astype(f32)         # (LH, O*L4)
    lb1f = (ls1 * lb1 + lt1).astype(f32)
    lw2f = (lw2 * ls2[:, None]).astype(f32)
    lb2f = (ls2 * lb2 + lt2).astype(f32)

    # A1: conv1 (+bn1) as block-Toeplitz GEMM on the flattened sample.
    #     rows = input feature (c, j) (unpadded position: zero padding drops out)
    #     cols = output feature (h, l1)
    jj = jnp.arange(L)[:, None]
    ll1 = jnp.arange(L1)[None, :]
    k1 = (jj + pad) - ll1
    ok1 = (k1 >= 0) & (k1 < K)
    A1 = jnp.where(ok1[None, None], w1f[:, :, jnp.clip(k1, 0, K - 1)], 0.0)   # (H,Cin,L,L1)
    A1 = A1.transpose(1, 2, 0, 3).reshape(Cin * L, H * L1)
    c1 = jnp.repeat(b1f, L1).reshape(1, H * L1)

    # P1: AvgPool1d(2) + zero re-padding for conv2, as a column map (h,l1) -> (h,jp).
    ll1 = jnp.arange(L1)[:, None]
    jp = jnp.arange(Lp)[None, :]
    pool1 = jnp.where((jp >= pad) & (jp < L2 + pad) & ((ll1 // 2) == (jp - pad)), 0.5, 0.0)
    P1 = jnp.kron(jnp.eye(H, dtype=f32), pool1)                                # (H*L1, H*Lp)

    # conv2 (+bn2) Toeplitz, rows (h, jp), cols (o, l3); fused with P1 (no ReLU between).
    jp = jnp.arange(Lp)[:, None]
    ll3 = jnp.arange(L3)[None, :]
    k2 = jp - ll3
    ok2 = (k2 >= 0) & (k2 < K)
    W2b = jnp.where(ok2[None, None], w2f[:, :, jnp.clip(k2, 0, K - 1)], 0.0)   # (O,H,Lp,L3)
    W2b = W2b.transpose(1, 2, 0, 3).reshape(H * Lp, O * L3)
    A2 = P1 @ W2b                                                              # (H*L1, O*L3)
    c2 = jnp.repeat(b2f, L3).reshape(1, O * L3)

    # A3: AvgPool1d(2) + flatten(1) + lin1 (+lin_bn1): rows (o, l3), cols LH.
    ll3 = jnp.arange(L3)
    l4 = ll3 // 2
    ok3 = l4 < L4                                    # drop odd tail of pool2
    lw1r = lw1f.reshape(LH, O, L4)
    A3 = 0.5 * jnp.where(ok3[None, None, :], lw1r[:, :, jnp.clip(l4, 0, L4 - 1)], 0.0)
    A3 = A3.transpose(1, 2, 0).reshape(O * L3, LH)
    c3 = lb1f.reshape(1, LH)

    # lin2 (+lin_bn2) and lin3.
    A4 = lw2f.T                                      # (LH, LN)
    c4 = lb2f.reshape(1, LN)
    A5 = lw3.astype(f32).T                           # (LN, 1)
    c5 = lb3.astype(f32).reshape(1, 1)

    mats = [m.astype(weight_dtype) for m in (A1, A2, A3, A4, A5)]
    biases = [b.astype(f32) for b in (c1, c2, c3, c4, c5)]
    return mats, biases


# ------------------------------------------------------------------------------ entry point
def head_bottleneck_forward(x, params, *, kernel_size, padding,
                            block_n=128, dot_dtype=jnp.float32):
    """Pallas TPU implementation of Head_Bottleneck.forward (eval mode)."""
    N, Cin, L = x.shape
    f32 = jnp.float32
    mats, biases = fold_params(params, seq_len=L, kernel_size=kernel_size,
                               padding=padding, weight_dtype=dot_dtype)

    x_flat = x.reshape(N, Cin * L).astype(f32)       # row-major (c, l) flatten per sample

    if N <= block_n:
        NB, Np, x_in = N, N, x_flat                  # single block == full array
    else:
        NB = block_n
        assert NB % 8 == 0, "block_n must be a multiple of 8 (sublane tiling)"
        Np = -(-N // NB) * NB
        x_in = x_flat if Np == N else jnp.pad(x_flat, ((0, Np - N), (0, 0)))

    grid = (Np // NB,)

    in_specs = [pl.BlockSpec((NB, Cin * L), lambda g: (g, 0))]   # batch-tiled input
    weight_inputs = []
    for a, c in zip(mats, biases):                               # VMEM-resident weights
        weight_inputs += [a, c]
        in_specs += [pl.BlockSpec(a.shape, lambda g: (0, 0)),
                     pl.BlockSpec(c.shape, lambda g: (0, 0))]

    out = pl.pallas_call(
        _head_kernel,
        out_shape=jax.ShapeDtypeStruct((Np, 1), f32),
        grid_spec=pltpu.PrefetchScalarGridSpec(
            num_scalar_prefetch=0,
            grid=grid,
            in_specs=in_specs,
            out_specs=pl.BlockSpec((NB, 1), lambda g: (g, 0)),
        ),
        compiler_params=pltpu.CompilerParams(
            dimension_semantics=("parallel",)),      # pipelined; shards over v7x's 2 TCs
    )(x_in, *weight_inputs)
    return out[:N]


# ------------------------------------------------------------------------- pure-JAX reference
def reference_forward(x, params, *, kernel_size, padding):
    """Pure-JAX mirror of the PyTorch forward (eval mode), for validation."""
    eps = 1e-5
    K, pad = kernel_size, padding
    hp = jax.lax.Precision.HIGHEST

    def conv1d(xin, w, b):
        xp = jnp.pad(xin, ((0, 0), (0, 0), (pad, pad)))
        Lout = xp.shape[2] - K + 1
        out = sum(jnp.einsum('oi,nil->nol', w[:, :, k], xp[:, :, k:k + Lout], precision=hp)
                  for k in range(K))
        return out + b[None, :, None]

    def bn_c(y, g, be, m, v):
        return g[None, :, None] * (y - m[None, :, None]) / jnp.sqrt(v[None, :, None] + eps) \
            + be[None, :, None]

    def bn_f(y, g, be, m, v):
        return g[None, :] * (y - m[None, :]) / jnp.sqrt(v[None, :] + eps) + be[None, :]

    def avgpool2(y):
        Lh = y.shape[2] // 2
        return y[:, :, :2 * Lh].reshape(y.shape[0], y.shape[1], Lh, 2).mean(-1)

    w1, b1, g1, be1, m1, v1 = params["conv1"]
    w2, b2, g2, be2, m2, v2 = params["conv2"]
    lw1, lb1, lg1, lbe1, lm1, lv1 = params["lin1"]
    lw2, lb2, lg2, lbe2, lm2, lv2 = params["lin2"]
    lw3, lb3 = params["lin3"]

    y = jax.nn.relu(bn_c(conv1d(x, w1, b1), g1, be1, m1, v1))   # dropout(eval) = identity
    y = avgpool2(y)
    y = jax.nn.relu(bn_c(conv1d(y, w2, b2), g2, be2, m2, v2))
    y = avgpool2(y)
    flat = y.reshape(y.shape[0], -1)
    z = jax.nn.relu(bn_f(jnp.dot(flat, lw1.T, precision=hp) + lb1, lg1, lbe1, lm1, lv1))
    z = jax.nn.relu(bn_f(jnp.dot(z, lw2.T, precision=hp) + lb2, lg2, lbe2, lm2, lv2))
    return jnp.dot(z, lw3.T, precision=hp) + lb3


if __name__ == "__main__":
    # Config: input_dim=4, hidden_dim=8, output_dim=8, kernel=3, padding=1, seq length 16
    # -> flatten = 8 * 4 = 32 = lin_input, lin_hidden=32, lin_next=16.  batch=16 so the
    # batch grid has 2 steps with block_n=8 (exercises the parallel/pipelined grid).
    N, Cin, H, O = 16, 4, 8, 8
    L, K, pad = 16, 3, 1
    LH, LN = 32, 16
    L4 = ((((L + 2 * pad - K + 1) // 2) + 2 * pad - K + 1) // 2)
    L_flat = O * L4  # 32

    key = jax.random.PRNGKey(0)
    ks = jax.random.split(key, 32)

    def normal(i, shape, scale=0.1):
        return scale * jax.random.normal(ks[i], shape, dtype=jnp.float32)

    def uniform(i, shape):
        return jax.random.uniform(ks[i], shape, minval=0.5, maxval=1.5, dtype=jnp.float32)

    # (weight, bias, bn_gamma, bn_beta, bn_running_mean, bn_running_var) per conv/linear.
    params = {
        "conv1": (normal(0, (H, Cin, K)), normal(1, (H,)),
                  uniform(2, (H,)), normal(3, (H,)), normal(4, (H,)), uniform(5, (H,))),
        "conv2": (normal(6, (O, H, K)), normal(7, (O,)),
                  uniform(8, (O,)), normal(9, (O,)), normal(10, (O,)), uniform(11, (O,))),
        "lin1": (normal(12, (LH, L_flat)), normal(13, (LH,)),
                 uniform(14, (LH,)), normal(15, (LH,)), normal(16, (LH,)), uniform(17, (LH,))),
        "lin2": (normal(18, (LN, LH)), normal(19, (LN,)),
                 uniform(20, (LN,)), normal(21, (LN,)), normal(22, (LN,)), uniform(23, (LN,))),
        "lin3": (normal(24, (1, LN)), normal(25, (1,))),
    }
    x = jax.random.normal(ks[26], (N, Cin, L), dtype=jnp.float32)

    out = head_bottleneck_forward(x, params, kernel_size=K, padding=pad, block_n=8)
    out = jax.block_until_ready(out)

    ref = reference_forward(x, params, kernel_size=K, padding=pad)
    err = float(jnp.max(jnp.abs(out - ref)))
    assert out.shape == (N, 1), out.shape
    assert err < 2e-3, f"max abs error vs reference: {err}"
    print("KERNEL_OK")
</pallas_src>

<mosaic_0001>
module attributes {stable_mosaic.version = 11 : i64} {
  func.func @_head_kernel(%arg0: i32, %arg1: memref<8x64xf32, #tpu.memory_space<vmem>>, %arg2: memref<64x128xf32, #tpu.memory_space<vmem>>, %arg3: memref<1x128xf32, #tpu.memory_space<vmem>>, %arg4: memref<128x64xf32, #tpu.memory_space<vmem>>, %arg5: memref<1x64xf32, #tpu.memory_space<vmem>>, %arg6: memref<64x32xf32, #tpu.memory_space<vmem>>, %arg7: memref<1x32xf32, #tpu.memory_space<vmem>>, %arg8: memref<32x16xf32, #tpu.memory_space<vmem>>, %arg9: memref<1x16xf32, #tpu.memory_space<vmem>>, %arg10: memref<16x1xf32, #tpu.memory_space<vmem>>, %arg11: memref<1x1xf32, #tpu.memory_space<vmem>>, %arg12: memref<8x1xf32, #tpu.memory_space<vmem>>) attributes {dimension_semantics = [#tpu.dimension_semantics<parallel>], iteration_bounds = array<i64: 2>, scalar_prefetch = 0 : i64, scratch_operands = 0 : i64, tpu.core_type = #tpu.core_type<tc>, window_params = [{transform_indices = @transform_0, window_bounds = array<i64: 8, 64>}, {pipeline_mode = #tpu.pipeline_mode<synchronous>, transform_indices = @transform_1, window_bounds = array<i64: 64, 128>}, {pipeline_mode = #tpu.pipeline_mode<synchronous>, transform_indices = @transform_2, window_bounds = array<i64: 1, 128>}, {pipeline_mode = #tpu.pipeline_mode<synchronous>, transform_indices = @transform_3, window_bounds = array<i64: 128, 64>}, {pipeline_mode = #tpu.pipeline_mode<synchronous>, transform_indices = @transform_4, window_bounds = array<i64: 1, 64>}, {pipeline_mode = #tpu.pipeline_mode<synchronous>, transform_indices = @transform_5, window_bounds = array<i64: 64, 32>}, {pipeline_mode = #tpu.pipeline_mode<synchronous>, transform_indices = @transform_6, window_bounds = array<i64: 1, 32>}, {pipeline_mode = #tpu.pipeline_mode<synchronous>, transform_indices = @transform_7, window_bounds = array<i64: 32, 16>}, {pipeline_mode = #tpu.pipeline_mode<synchronous>, transform_indices = @transform_8, window_bounds = array<i64: 1, 16>}, {pipeline_mode = #tpu.pipeline_mode<synchronous>, transform_indices = @transform_9, window_bounds = array<i64: 16, 1>}, {pipeline_mode = #tpu.pipeline_mode<synchronous>, transform_indices = @transform_10, window_bounds = array<i64: 1, 1>}, {transform_indices = @transform_11, window_bounds = array<i64: 8, 1>}]} {
    %c0 = arith.constant 0 : index
    %c0_0 = arith.constant 0 : index
    %0 = vector.load %arg1[%c0, %c0_0] : memref<8x64xf32, #tpu.memory_space<vmem>>, vector<8x64xf32>
    %c0_1 = arith.constant 0 : index
    %c0_2 = arith.constant 0 : index
    %1 = vector.load %arg2[%c0_1, %c0_2] : memref<64x128xf32, #tpu.memory_space<vmem>>, vector<64x128xf32>
    %cst = arith.constant dense<0.000000e+00> : vector<8x128xf32>
    %2 = tpu.matmul %0, %1, %cst {dimension_numbers = #tpu.dot_dimension_numbers<[1], [0], [0], [1], [0, 0, 1, 1], [], []>} : vector<8x64xf32>, vector<64x128xf32>, vector<8x128xf32> -> vector<8x128xf32>
    %c0_3 = arith.constant 0 : index
    %c0_4 = arith.constant 0 : index
    %3 = vector.load %arg3[%c0_3, %c0_4] : memref<1x128xf32, #tpu.memory_space<vmem>>, vector<1x128xf32>
    %4 = vector.broadcast %3 : vector<1x128xf32> to vector<8x128xf32>
    %5 = arith.addf %2, %4 : vector<8x128xf32>
    %cst_5 = arith.constant 0.000000e+00 : f32
    %6 = vector.broadcast %cst_5 : f32 to vector<8x128xf32>
    %7 = arith.maximumf %5, %6 : vector<8x128xf32>
    %c0_6 = arith.constant 0 : index
    %c0_7 = arith.constant 0 : index
    %8 = vector.load %arg4[%c0_6, %c0_7] : memref<128x64xf32, #tpu.memory_space<vmem>>, vector<128x64xf32>
    %cst_8 = arith.constant dense<0.000000e+00> : vector<8x64xf32>
    %9 = tpu.matmul %7, %8, %cst_8 {dimension_numbers = #tpu.dot_dimension_numbers<[1], [0], [0], [1], [0, 0, 1, 1], [], []>} : vector<8x128xf32>, vector<128x64xf32>, vector<8x64xf32> -> vector<8x64xf32>
    %c0_9 = arith.constant 0 : index
    %c0_10 = arith.constant 0 : index
    %10 = vector.load %arg5[%c0_9, %c0_10] : memref<1x64xf32, #tpu.memory_space<vmem>>, vector<1x64xf32>
    %11 = vector.broadcast %10 : vector<1x64xf32> to vector<8x64xf32>
    %12 = arith.addf %9, %11 : vector<8x64xf32>
    %cst_11 = arith.constant 0.000000e+00 : f32
    %13 = vector.broadcast %cst_11 : f32 to vector<8x64xf32>
    %14 = arith.maximumf %12, %13 : vector<8x64xf32>
    %c0_12 = arith.constant 0 : index
    %c0_13 = arith.constant 0 : index
    %15 = vector.load %arg6[%c0_12, %c0_13] : memref<64x32xf32, #tpu.memory_space<vmem>>, vector<64x32xf32>
    %cst_14 = arith.constant dense<0.000000e+00> : vector<8x32xf32>
    %16 = tpu.matmul %14, %15, %cst_14 {dimension_numbers = #tpu.dot_dimension_numbers<[1], [0], [0], [1], [0, 0, 1, 1], [], []>} : vector<8x64xf32>, vector<64x32xf32>, vector<8x32xf32> -> vector<8x32xf32>
    %c0_15 = arith.constant 0 : index
    %c0_16 = arith.constant 0 : index
    %17 = vector.load %arg7[%c0_15, %c0_16] : memref<1x32xf32, #tpu.memory_space<vmem>>, vector<1x32xf32>
    %18 = vector.broadcast %17 : vector<1x32xf32> to vector<8x32xf32>
    %19 = arith.addf %16, %18 : vector<8x32xf32>
    %cst_17 = arith.constant 0.000000e+00 : f32
    %20 = vector.broadcast %cst_17 : f32 to vector<8x32xf32>
    %21 = arith.maximumf %19, %20 : vector<8x32xf32>
    %c0_18 = arith.constant 0 : index
    %c0_19 = arith.constant 0 : index
    %22 = vector.load %arg8[%c0_18, %c0_19] : memref<32x16xf32, #tpu.memory_space<vmem>>, vector<32x16xf32>
    %cst_20 = arith.constant dense<0.000000e+00> : vector<8x16xf32>
    %23 = tpu.matmul %21, %22, %cst_20 {dimension_numbers = #tpu.dot_dimension_numbers<[1], [0], [0], [1], [0, 0, 1, 1], [], []>} : vector<8x32xf32>, vector<32x16xf32>, vector<8x16xf32> -> vector<8x16xf32>
    %c0_21 = arith.constant 0 : index
    %c0_22 = arith.constant 0 : index
    %24 = vector.load %arg9[%c0_21, %c0_22] : memref<1x16xf32, #tpu.memory_space<vmem>>, vector<1x16xf32>
    %25 = vector.broadcast %24 : vector<1x16xf32> to vector<8x16xf32>
    %26 = arith.addf %23, %25 : vector<8x16xf32>
    %cst_23 = arith.constant 0.000000e+00 : f32
    %27 = vector.broadcast %cst_23 : f32 to vector<8x16xf32>
    %28 = arith.maximumf %26, %27 : vector<8x16xf32>
    %c0_24 = arith.constant 0 : index
    %c0_25 = arith.constant 0 : index
    %29 = vector.load %arg10[%c0_24, %c0_25] : memref<16x1xf32, #tpu.memory_space<vmem>>, vector<16x1xf32>
    %cst_26 = arith.constant dense<0.000000e+00> : vector<8x1xf32>
    %30 = tpu.matmul %28, %29, %cst_26 {dimension_numbers = #tpu.dot_dimension_numbers<[1], [0], [0], [1], [0, 0, 1, 1], [], []>} : vector<8x16xf32>, vector<16x1xf32>, vector<8x1xf32> -> vector<8x1xf32>
    %c0_27 = arith.constant 0 : index
    %c0_28 = arith.constant 0 : index
    %31 = vector.load %arg11[%c0_27, %c0_28] : memref<1x1xf32, #tpu.memory_space<vmem>>, vector<1x1xf32>
    %32 = vector.broadcast %31 : vector<1x1xf32> to vector<8x1xf32>
    %33 = arith.addf %30, %32 : vector<8x1xf32>
    %c0_29 = arith.constant 0 : index
    %c0_30 = arith.constant 0 : index
    %34 = vector.load %arg12[%c0_29, %c0_30] : memref<8x1xf32, #tpu.memory_space<vmem>>, vector<8x1xf32>
    tpu.vector_store %arg12[%c0_29, %c0_30], %33 {strides = array<i32>} : memref<8x1xf32, #tpu.memory_space<vmem>>, vector<8x1xf32>,
    return
  }
  func.func @transform_0(%arg0: i32) -> (i32, i32) {
    %c0_i32 = arith.constant 0 : i32
    %c0_i32_0 = arith.constant 0 : i32
    return %arg0, %c0_i32 : i32, i32
  }
  func.func @transform_1(%arg0: i32) -> (i32, i32) {
    %c0_i32 = arith.constant 0 : i32
    %c0_i32_0 = arith.constant 0 : i32
    %c0_i32_1 = arith.constant 0 : i32
    return %c0_i32, %c0_i32_0 : i32, i32
  }
  func.func @transform_2(%arg0: i32) -> (i32, i32) {
    %c0_i32 = arith.constant 0 : i32
    %c0_i32_0 = arith.constant 0 : i32
    %c0_i32_1 = arith.constant 0 : i32
    return %c0_i32, %c0_i32_0 : i32, i32
  }
  func.func @transform_3(%arg0: i32) -> (i32, i32) {
    %c0_i32 = arith.constant 0 : i32
    %c0_i32_0 = arith.constant 0 : i32
    %c0_i32_1 = arith.constant 0 : i32
    return %c0_i32, %c0_i32_0 : i32, i32
  }
  func.func @transform_4(%arg0: i32) -> (i32, i32) {
    %c0_i32 = arith.constant 0 : i32
    %c0_i32_0 = arith.constant 0 : i32
    %c0_i32_1 = arith.constant 0 : i32
    return %c0_i32, %c0_i32_0 : i32, i32
  }
  func.func @transform_5(%arg0: i32) -> (i32, i32) {
    %c0_i32 = arith.constant 0 : i32
    %c0_i32_0 = arith.constant 0 : i32
    %c0_i32_1 = arith.constant 0 : i32
    return %c0_i32, %c0_i32_0 : i32, i32
  }
  func.func @transform_6(%arg0: i32) -> (i32, i32) {
    %c0_i32 = arith.constant 0 : i32
    %c0_i32_0 = arith.constant 0 : i32
    %c0_i32_1 = arith.constant 0 : i32
    return %c0_i32, %c0_i32_0 : i32, i32
  }
  func.func @transform_7(%arg0: i32) -> (i32, i32) {
    %c0_i32 = arith.constant 0 : i32
    %c0_i32_0 = arith.constant 0 : i32
    %c0_i32_1 = arith.constant 0 : i32
    return %c0_i32, %c0_i32_0 : i32, i32
  }
  func.func @transform_8(%arg0: i32) -> (i32, i32) {
    %c0_i32 = arith.constant 0 : i32
    %c0_i32_0 = arith.constant 0 : i32
    %c0_i32_1 = arith.constant 0 : i32
    return %c0_i32, %c0_i32_0 : i32, i32
  }
  func.func @transform_9(%arg0: i32) -> (i32, i32) {
    %c0_i32 = arith.constant 0 : i32
    %c0_i32_0 = arith.constant 0 : i32
    %c0_i32_1 = arith.constant 0 : i32
    return %c0_i32, %c0_i32_0 : i32, i32
  }
  func.func @transform_10(%arg0: i32) -> (i32, i32) {
    %c0_i32 = arith.constant 0 : i32
    %c0_i32_0 = arith.constant 0 : i32
    %c0_i32_1 = arith.constant 0 : i32
    return %c0_i32, %c0_i32_0 : i32, i32
  }
  func.func @transform_11(%arg0: i32) -> (i32, i32) {
    %c0_i32 = arith.constant 0 : i32
    %c0_i32_0 = arith.constant 0 : i32
    return %arg0, %c0_i32 : i32, i32
  }
}

</mosaic_0001>

<bundles_post_ra>
// kernel: tpu_custom_call.1
= control target key start
LH: loop header
LB: loop body
LE: loop exit
PB: predicated region body
PF: predicated region fallthrough
CT: control target
= control target key end

     0   :  { %s1176_s19 = smov 0   ;;  %s1357_s0 = inlined_call_operand.vmem [shape: f32[16,64], index: 0, kind: input, shape index: {}]   ;;  %s1358_s1 = inlined_call_operand.vmem [shape: f32[64,128], index: 1, kind: input, shape index: {}]   ;;  %s1359_s2 = inlined_call_operand.vmem [shape: f32[1,128], index: 2, kind: input, shape index: {}]   ;;  %s1360_s3 = inlined_call_operand.vmem [shape: f32[128,64], index: 3, kind: input, shape index: {}]   ;;  %s1361_s4 = inlined_call_operand.vmem [shape: f32[1,64], index: 4, kind: input, shape index: {}]   ;;  %s1362_s5 = inlined_call_operand.vmem [shape: f32[64,32], index: 5, kind: input, shape index: {}]   ;;  %s1363_s6 = inlined_call_operand.vmem [shape: f32[1,32], index: 6, kind: input, shape index: {}]   ;;  %s1364_s7 = inlined_call_operand.vmem [shape: f32[32,16], index: 7, kind: input, shape index: {}]   ;;  %s1365_s8 = inlined_call_operand.vmem [shape: f32[1,16], index: 8, kind: input, shape index: {}]   ;;  %s1366_s9 = inlined_call_operand.vmem [shape: f32[16,1], index: 9, kind: input, shape index: {}]   ;;  %s1367_s10 = inlined_call_operand.<no memory space> [shape: f32[1,1], index: 10, kind: input, shape index: {}]   ;;  %s1368_s11 = inlined_call_operand.vmem [shape: f32[16,1], index: 11, kind: output, shape index: {}]  }
   0x1   :  { %v16_v0 = vstv %s1367_s10 }
   0x2   :  { %17 = vst [vmem:[#allocation2] sm:$0x1] %v16_v0 }
   0x3 LB: > { %s882_s20 = sadd.s32 4294967295, %s1108_s19   ;;  %p886_p0 = scmp.ge.s32.totalorder %s1108_s19, 1  ;;  %s1108_s19 = sphi %s1176_s19, %s23_s19  }
   0x4   : > { %p338_p1 = scmp.lt.s32.totalorder %s1108_s19, 3 }
   0x6   : > { %p339_p2 = pnand %p886_p0, %p338_p1 }
   0x7   : > { %v385_v1 = vld [vmem:[%s1358_s1] sm:$0xff] (!%p339_p2)  ;;  %v386_v2 = vld [vmem:[%s1358_s1 + $0x8] sm:$0xff] (!%p339_p2)  ;;  %v387_v3 = vld [vmem:[%s1358_s1 + $0x10] sm:$0xff] (!%p339_p2)  ;;  %v1110_v4 = vmov (!%p339_p2), 0.0|0.0   ;;  %vm1111_vm0 = vmmov (!%p339_p2), 0   ;;  %v1112_v7 = vmov (!%p339_p2), 0.0  }
   0x8   : > { %342 = sbr.rel (%p339_p2) target bundleno = 1104 (0x450), region = 64  ;;  %1034 = vmatprep.subr.bf16.mxu0 (!%p339_p2), %v1110_v4  ;;  %v1035_v5 = vpack.c.bf16 (!%p339_p2), %v386_v2, %v385_v1  ;;  %v388_v6 = vld [vmem:[%s1358_s1 + $0x18] sm:$0xff] (!%p339_p2)  ;;  %959 = vmatprep.mubr.msk.f32.mxu0 (!%p339_p2), %vm1111_vm0, %v1112_v7  ;;  %p376_p3 = scmp.lt.s32.totalorder (!%p339_p2), %s882_s20, 1  ;;  %v475_v8 = vld [vmem:[%s1360_s3] sm:$0xff] (!%p339_p2)  ;;  %v476_v10 = vld [vmem:[%s1360_s3 + $0x8] sm:$0xff] (!%p339_p2)  ;;  %vm400_vm1 = vcmask (!%p339_p2), 523264  }
   0x9   : > { %1046 = vmatprep.subr.bf16.mxu1 (!%p339_p2), %v1110_v4  ;;  %994 = vmatprep.mubr.msk.f32.mxu1 (!%p339_p2), %vm1111_vm0, %v1112_v7  ;;  %v1038_v9 = vpack.c.bf16 (!%p339_p2), %v388_v6, %v387_v3  ;;  %v477_v11 = vld [vmem:[%s1360_s3 + $0x10] sm:$0xff] (!%p339_p2)  ;;  %v478_v12 = vld [vmem:[%s1360_s3 + $0x18] sm:$0xff] (!%p339_p2)  ;;  %v389_v13 = vld [vmem:[%s1358_s1 + $0x20] sm:$0xff] (!%p339_p2)  ;;  %v1047_v15 = vpack.c.bf16 (!%p339_p2), %v476_v10, %v475_v8  ;;  %vm669_vm2 = vcmask (!%p339_p2), 261120   ;;  %vm753_vm3 = vcmask (!%p339_p2), 130048  }
   0xa   : > { %1036 = vmatpush3.bf16.msra.mxu0 (!%p339_p2), %v1035_v5  ;;  %v390_v14 = vld [vmem:[%s1358_s1 + $0x28] sm:$0xff] (!%p339_p2)  ;;  %v1050_v16 = vpack.c.bf16 (!%p339_p2), %v478_v12, %v477_v11  ;;  %v479_v18 = vld [vmem:[%s1360_s3 + $0x20] sm:$0xff] (!%p339_p2)  ;;  %v391_v20 = vld [vmem:[%s1358_s1 + $0x30] sm:$0xff] (!%p339_p2)  ;;  %vm827_vm4 = vcmask (!%p339_p2), 7168  }
   0xb   : > { %1037 = vmatprep.subr.bf16.mxu0 (!%p339_p2), %v1110_v4  ;;  %1048 = vmatpush3.bf16.msra.mxu1 (!%p339_p2), %v1047_v15  ;;  %v1041_v17 = vpack.c.bf16 (!%p339_p2), %v390_v14, %v389_v13  ;;  %v480_v19 = vld [vmem:[%s1360_s3 + $0x28] sm:$0xff] (!%p339_p2)  ;;  %v392_v21 = vld [vmem:[%s1358_s1 + $0x38] sm:$0xff] (!%p339_p2)  ;;  %v481_v24 = vld [vmem:[%s1360_s3 + $0x30] sm:$0xff] (!%p339_p2) }
   0xc   : > { %1049 = vmatprep.subr.bf16.mxu1 (!%p339_p2), %v1110_v4  ;;  %v1053_v22 = vpack.c.bf16 (!%p339_p2), %v480_v19, %v479_v18  ;;  %v1044_v23 = vpack.c.bf16 (!%p339_p2), %v392_v21, %v391_v20  ;;  %v482_v25 = vld [vmem:[%s1360_s3 + $0x38] sm:$0xff] (!%p339_p2)  ;;  %v483_v28 = vld [vmem:[%s1360_s3 + $0x40] sm:$0xff] (!%p339_p2)  ;;  %v484_v29 = vld [vmem:[%s1360_s3 + $0x48] sm:$0xff] (!%p339_p2) }
   0xd   : > { %v1056_v26 = vpack.c.bf16 (!%p339_p2), %v482_v25, %v481_v24  ;;  %v1059_v30 = vpack.c.bf16 (!%p339_p2), %v484_v29, %v483_v28  ;;  %v485_v31 = vld [vmem:[%s1360_s3 + $0x50] sm:$0xff] (!%p339_p2)  ;;  %v486_v32 = vld [vmem:[%s1360_s3 + $0x58] sm:$0xff] (!%p339_p2)  ;;  %v487_v34 = vld [vmem:[%s1360_s3 + $0x60] sm:$0xff] (!%p339_p2) }
   0xe   : > { %1039 = vmatpush3.bf16.msra.mxu0 (!%p339_p2), %v1038_v9  ;;  %v1062_v33 = vpack.c.bf16 (!%p339_p2), %v486_v32, %v485_v31  ;;  %v488_v35 = vld [vmem:[%s1360_s3 + $0x68] sm:$0xff] (!%p339_p2)  ;;  %v489_v37 = vld [vmem:[%s1360_s3 + $0x70] sm:$0xff] (!%p339_p2)  ;;  %v490_v38 = vld [vmem:[%s1360_s3 + $0x78] sm:$0xff] (!%p339_p2) }
   0xf   : > { %s1370_s20 = smov (!%p376_p3, %s882_s20), 1  ;;  %1040 = vmatprep.subr.bf16.mxu0 %v1110_v4  ;;  %1051 = vmatpush3.bf16.msra.mxu1 %v1050_v16  ;;  %v1065_v36 = vpack.c.bf16 %v488_v35, %v487_v34  ;;  %v1068_v39 = vpack.c.bf16 %v490_v38, %v489_v37  ;;  %v569_v40 = vld [vmem:[%s1362_s5] sm:$0xff]  ;;  %v570_v41 = vld [vmem:[%s1362_s5 + $0x8] sm:$0xff]  ;;  %v571_v42 = vld [vmem:[%s1362_s5 + $0x10] sm:$0xff] }
  0x10   : > { %s887_s30 = sshll.u32 %s1370_s20, 3  ;;  %1052 = vmatprep.subr.bf16.mxu1 %v1110_v4  ;;  %v1071_v43 = vpack.c.bf16 %v570_v41, %v569_v40  ;;  %v572_v44 = vld [vmem:[%s1362_s5 + $0x18] sm:$0xff]  ;;  %v573_v46 = vld [vmem:[%s1362_s5 + $0x20] sm:$0xff]  ;;  %v574_v47 = vld [vmem:[%s1362_s5 + $0x28] sm:$0xff] }
  0x11   : > { %s379_s18 = scalar_lea.vmem %s1357_s0, %s887_s30  ;;  %v1074_v45 = vpack.c.bf16 %v572_v44, %v571_v42  ;;  %v1077_v48 = vpack.c.bf16 %v574_v47, %v573_v46  ;;  %v889_v49 = vld [vmem:[%s1359_s2] ss:$0 sm:$0xff]  ;;  %v575_v54 = vld [vmem:[%s1362_s5 + $0x30] sm:$0xff]  ;;  %v576_v55 = vld [vmem:[%s1362_s5 + $0x38] sm:$0xff]  ;;  %s383_s23 = scalar_lea.vmem %s1368_s11, %s887_s30 }
  0x12   : > { %1042 = vmatpush3.bf16.msra.mxu0 %v1041_v17  ;;  %v384_v27 = vld [vmem:[%s379_s18] sm:$0xff]  ;;  %v1080_v56 = vpack.c.bf16 %v576_v55, %v575_v54  ;;  %v659_v59 = vld [vmem:[%s1364_s7 + $0x8] sm:$0xff]  ;;  %v660_v1 = vld [vmem:[%s1364_s7 + $0x10] sm:$0xff] }
  0x13   : > { %1043 = vmatprep.subr.bf16.mxu0 %v1110_v4  ;;  %1054 = vmatpush3.bf16.msra.mxu1 %v1053_v22  ;;  %v891_v57 = vld [vmem:[%s1361_s4] ss:$0 sm:$0xff]  ;;  %v661_v2 = vld [vmem:[%s1364_s7 + $0x18] sm:$0xff]  ;;  %v745_v10 = vld [vmem:[%s1366_s9 + $0x8] sm:$0xff] }
  0x14   : > { %1055 = vmatprep.subr.bf16.mxu1 %v1110_v4  ;;  %v658_v58 = vld [vmem:[%s1364_s7] sm:$0xff]  ;;  %v1086_v3 = vpack.c.bf16 %v661_v2, %v660_v1 }
  0x15   : > { %v1083_v63 = vpack.c.bf16 %v659_v59, %v658_v58  ;;  %v892_v5 = vld [vmem:[%s1363_s6] ss:$0 sm:$0xff] }
  0x16   : > { %1045 = vmatpush3.bf16.msra.mxu0 %v1044_v23  ;;  %v894_v12 = vld [vmem:[%s1365_s8] ss:$0 sm:$0xff] }
  0x17   : > { %1070 = vmatprep.subr.bf16.mxu0 %v1110_v4  ;;  %1057 = vmatpush3.bf16.msra.mxu1 %v1056_v26  ;;  %v896_v17 = vld [vmem:[#allocation2] ss:$0 sm:$0xff] }
  0x18   : > { %1058 = vmatprep.subr.bf16.mxu1 %v1110_v4 }
  0x19   : > { %960 = vmatmul.mubr.msk.f32.vlgmr.msra.gmra.mrb[0].mxu0 %vm400_vm1, %v384_v27 }
  0x1a   : > { %1013 = vmatprep.mubr.msk.f32.mxu0 %vm1111_vm0, %v1112_v7  ;;  %1072 = vmatpush3.bf16.msra.mxu0 %v1071_v43 }
  0x1b   : > { %1060 = vmatpush3.bf16.msra.mxu1 %v1059_v30  ;;  %1073 = vmatprep.subr.bf16.mxu0 %v1110_v4 }
  0x1c   : > { %1061 = vmatprep.subr.bf16.mxu1 %v1110_v4 }
  0x1e   : > { %1075 = vmatpush3.bf16.msra.mxu0 %v1074_v45 }
  0x1f   : > { %1063 = vmatpush3.bf16.msra.mxu1 %v1062_v33  ;;  %1076 = vmatprep.subr.bf16.mxu0 %v1110_v4 }
  0x20   : > { %1064 = vmatprep.subr.bf16.mxu1 %v1110_v4 }
  0x22   : > { %1078 = vmatpush3.bf16.msra.mxu0 %v1077_v48 }
  0x23   : > { %1066 = vmatpush3.bf16.msra.mxu1 %v1065_v36  ;;  %1079 = vmatprep.subr.bf16.mxu0 %v1110_v4 }
  0x24   : > { %1067 = vmatprep.subr.bf16.mxu1 %v1110_v4 }
  0x26   : > { %1081 = vmatpush3.bf16.msra.mxu0 %v1080_v56 }
  0x27   : > { %1069 = vmatpush3.bf16.msra.mxu1 %v1068_v39  ;;  %1082 = vmatprep.subr.bf16.mxu0 %v1110_v4 }
  0x28   : > { %1088 = vmatprep.subr.bf16.mxu1 %v1110_v4 }
  0xec   : > { %v470_v50 = vpop.f32.mrb[0].mxu0 }
  0xed   : > { %v471_v51 = vadd.f32 %v889_v49, %v470_v50  ;;  %v961_v52 = vpop.f32.mrb[1].mxu0 }
  0xef   : > { %v474_v53 = vmax.f32 %v471_v51, 0.0 }
  0xf1   : > { %995 = vmatmul.mubr.f32.vlgmr.msra.gmra.mrb[0].mxu1 %v474_v53 }
  0xf2   : > { %1031 = vmatprep.mubr.msk.f32.mxu1 %vm1111_vm0, %v1112_v7 }
 0x1c4   : > { %v564_v60 = vpop.f32.mrb[0].mxu1 }
 0x1c5   : > { %v565_v61 = vadd.f32 %v891_v57, %v564_v60  ;;  %v996_v62 = vpop.f32.mrb[1].mxu1 }
 0x1c7   : > { %v568_v0 = vmax.f32 %v565_v61, 0.0 }
 0x1c9   : > { %1014 = vmatmul.mubr.msk.f32.vlgmr.msra.gmra.mrb[2].mxu0 %vm400_vm1, %v568_v0 }
 0x1ca   : > { %1084 = vmatpush3.bf16.msra.mxu0 %v1083_v63  ;;  %1024 = vmatprep.mubr.msk.f32.mxu0 %vm1111_vm0, %v1112_v7  ;;  %v744_v7 = vld [vmem:[%s1366_s9] sm:$0xff] }
 0x1cb   : > { %1085 = vmatprep.subr.bf16.mxu0 %v1110_v4  ;;  %v1089_v11 = vpack.c.bf16 %v745_v10, %v744_v7 }
 0x1cd   : > { %1090 = vmatpush3.bf16.msra.mxu1 %v1089_v11 }
 0x1ce   : > { %1087 = vmatpush3.bf16.msra.mxu0 %v1086_v3 }
 0x29c   : > { %v653_v6 = vpop.f32.mrb[2].mxu0 }
 0x29d   : > { %v654_v8 = vadd.f32 %v892_v5, %v653_v6  ;;  %v1015_v9 = vpop.f32.mrb[3].mxu0 }
 0x29f   : > { %v657_v4 = vmax.f32 %v654_v8, 0.0 }
 0x2a1   : > { %1025 = vmatmul.mubr.msk.f32.vlgmr.msra.gmra.mrb[4].mxu0 %vm669_vm2, %v657_v4 }
 0x374   : > { %v739_v13 = vpop.f32.mrb[4].mxu0 }
 0x375   : > { %v740_v14 = vadd.f32 %v894_v12, %v739_v13  ;;  %v1026_v15 = vpop.f32.mrb[5].mxu0 }
 0x377   : > { %v743_v16 = vmax.f32 %v740_v14, 0.0 }
 0x379   : > { %1032 = vmatmul.mubr.msk.f32.vlgmr.msra.gmra.mrb[2].mxu1 %vm753_vm3, %v743_v16 }
 0x44c   : > { %v823_v18 = vpop.f32.mrb[2].mxu1 }
 0x44d   : > { %v824_v19 = vadd.f32 %v896_v17, %v823_v18  ;;  %v1033_v20 = vpop.f32.mrb[3].mxu1 }
 0x44f   : > { %828 = vst.msk [vmem:[%s383_s23] sm:$0xff] %vm827_vm4, %v824_v19 }
 0x450 PF: > { %s23_s19 = sadd.s32 1, %s1108_s19  }
 0x451   : > { %p20_p4 = scmp.ge.s32.totalorder %s23_s19, 4  }
 0x453   :  { %22 = sbr.rel (!%p20_p4) target bundleno = 3 (0x3), region = 94 }

</bundles_post_ra>
